<compile_context>
chip_gen: v5e
topology: v5e:2x2
jax: 0.10.0
libtpu: 0.0.40
codegen_flags: <defaults>
</compile_context>

<pallas_src>
import jax
import jax.numpy as jnp
from jax.experimental import pallas as pl
from jax.experimental.pallas import tpu as pltpu

# ---------------- model hyper-parameters (small, synthetic) -----------------
IN_DIMS = 32      # input hidden size (idim)
N_CHANS = 64      # conv channels
KERNEL_SIZE = 3   # conv kernel (padding = 1)
N_LAYERS = 2
OFFSET = 1.0
LN_EPS = 1e-12

B = 2             # batch
T = 16            # Tmax


# --------------------------------- kernel -----------------------------------
def duration_predictor_kernel(
    xcat_ref,   # (BT, 3*IN_DIMS)  layer-1 conv taps [x[t-1], x[t], x[t+1]]
    s_ref,      # (2*BT, BT)       [S_prev; S_next] masked shift matrices
    mrow_ref,   # (1, BT)          frame mask, lane-dense (1 = keep)
    w1_ref,     # (3*IN_DIMS, N_CHANS)
    w2_ref,     # (3*N_CHANS, N_CHANS)
    pv_ref,     # (8, N_CHANS)     rows: b1,g1,be1,b2,g2,be2,wl,[bl,0...]
    out_ref,    # (1, BT)          predicted durations, lane-dense
):
    n = xcat_ref.shape[0]                       # BT frames

    def relu_layernorm(y, gamma, beta):
        # ReLU then LayerNorm over channels (torch LayerNorm(n_chans, dim=1)).
        y = jnp.maximum(y, 0.0)
        mu = jnp.mean(y, axis=-1, keepdims=True)
        var = jnp.mean((y - mu) * (y - mu), axis=-1, keepdims=True)
        return (y - mu) * jax.lax.rsqrt(var + LN_EPS) * gamma + beta
        # Dropout is identity at inference.

    b1, g1, be1 = pv_ref[0:1, :], pv_ref[1:2, :], pv_ref[2:3, :]
    b2, g2, be2 = pv_ref[3:4, :], pv_ref[4:5, :], pv_ref[5:6, :]
    wl, bl = pv_ref[6:7, :], pv_ref[7:8, 0:1]

    # ---- layer 1: Conv1d(k=3,pad=1) as ONE (n,3Ci)x(3Ci,C) MXU matmul ----
    y1 = jnp.dot(xcat_ref[...], w1_ref[...],
                 preferred_element_type=jnp.float32) + b1
    h1 = relu_layernorm(y1, g1, be1)            # (n, C)

    # ---- layer 2: shifted taps via masked shift matrices, then fused conv ----
    # hp[t] = mask[t-1]*h1[t-1] (0 at sequence starts), hn[t] analogous.
    hp = jnp.dot(s_ref[0:n, :], h1, preferred_element_type=jnp.float32)
    hn = jnp.dot(s_ref[n:2 * n, :], h1, preferred_element_type=jnp.float32)
    hcat = jnp.concatenate([hp, h1, hn], axis=-1)            # (n, 3*C)
    y2 = jnp.dot(hcat, w2_ref[...],
                 preferred_element_type=jnp.float32) + b2
    h2 = relu_layernorm(y2, g2, be2)

    # ---- Linear(C -> 1), masked, out2dur; lane-dense (1, n) output ----
    # (wl . h2[t] + bl) * m[t]; padded frames -> logits 0 -> dur 0.
    logits = (jnp.dot(wl, h2.T, preferred_element_type=jnp.float32) + bl) \
        * mrow_ref[...]
    out_ref[...] = jnp.maximum(jnp.exp(logits) - OFFSET, 0.0)


# -------------------------------- wrapper ------------------------------------
def duration_predictor(xs, x_masks, params):
    """xs: (B, T, IN_DIMS) float32; x_masks: (B, T) bool (True = padded).
    Returns dur_pred: (B, T) float32 (infer=True path: exp(x)-offset, clamped)."""
    Bb, Tt, Ci = xs.shape
    BT = Bb * Tt
    f32 = jnp.float32

    m = 1.0 - x_masks.astype(f32)                             # (B, T), 1 = keep
    m_flat = m.reshape(BT)
    m_row = m.reshape(1, BT)

    # Layer-1 conv taps, lane-concatenated in plain JAX (zero-padded per seq).
    x_prev = jnp.pad(xs, ((0, 0), (1, 0), (0, 0)))[:, :-1]    # x[t-1]
    x_next = jnp.pad(xs, ((0, 0), (0, 1), (0, 0)))[:, 1:]     # x[t+1]
    xcat = jnp.concatenate([x_prev, xs, x_next], axis=-1).reshape(BT, 3 * Ci)

    # Layer-2 shift matrices: time shift + per-sequence zero padding +
    # frame masking of the shifted taps, all folded in.
    r = jnp.arange(BT)
    prev_ok = ((r % Tt) != 0)[:, None]
    next_ok = ((r % Tt) != (Tt - 1))[:, None]
    sp = (jnp.equal(r[:, None] - 1, r[None, :]) & prev_ok).astype(f32)
    sn = (jnp.equal(r[:, None] + 1, r[None, :]) & next_ok).astype(f32)
    smat = jnp.concatenate([sp * m_flat[None, :], sn * m_flat[None, :]], axis=0)

    # Conv weights reshaped once for the fused tap-concat matmuls.
    w1 = params["w1"].reshape(KERNEL_SIZE * Ci, N_CHANS)
    w2 = params["w2"].reshape(KERNEL_SIZE * N_CHANS, N_CHANS)

    # Pack the 8 tiny per-layer vectors into one (8, N_CHANS) slab.
    pv = jnp.concatenate([
        params["b1"], params["g1"], params["be1"],
        params["b2"], params["g2"], params["be2"],
        params["wl"],
        jnp.pad(params["bl"], ((0, 0), (0, N_CHANS - 1))),
    ], axis=0)

    full = lambda arr: pl.BlockSpec(arr.shape, lambda i, nd=arr.ndim: (0,) * nd)

    out = pl.pallas_call(
        duration_predictor_kernel,
        out_shape=jax.ShapeDtypeStruct((1, BT), f32),
        grid=(1,),   # whole problem in one block; VMEM use is a few tens of KiB
        in_specs=[full(xcat), full(smat), full(m_row), full(w1), full(w2), full(pv)],
        out_specs=pl.BlockSpec((1, BT), lambda i: (0, 0)),
        compiler_params=pltpu.CompilerParams(dimension_semantics=("arbitrary",)),
    )(xcat, smat, m_row, w1, w2, pv)
    return out.reshape(Bb, Tt)


# --------------------------- pure-JAX reference -------------------------------
def reference(xs, x_masks, params):
    masks = (1.0 - x_masks.astype(jnp.float32))[:, :, None]        # (B, T, 1)
    h = xs
    for w, b, g, be in [(params["w1"], params["b1"], params["g1"], params["be1"]),
                        (params["w2"], params["b2"], params["g2"], params["be2"])]:
        hp = jnp.pad(h, ((0, 0), (1, 1), (0, 0)))
        y = (jnp.einsum("btc,cd->btd", hp[:, :-2], w[0])
             + jnp.einsum("btc,cd->btd", hp[:, 1:-1], w[1])
             + jnp.einsum("btc,cd->btd", hp[:, 2:], w[2]) + b)
        y = jnp.maximum(y, 0.0)
        mu = y.mean(-1, keepdims=True)
        var = ((y - mu) ** 2).mean(-1, keepdims=True)
        y = (y - mu) / jnp.sqrt(var + LN_EPS) * g + be
        h = y * masks
    logits = (jnp.sum(h * params["wl"], -1, keepdims=True)
              + params["bl"][0, 0]) * masks
    return jnp.maximum(jnp.exp(logits[:, :, 0]) - OFFSET, 0.0)


# ---------------------------------- main --------------------------------------
if __name__ == "__main__":
    key = jax.random.PRNGKey(0)
    ks = jax.random.split(key, 12)

    # Deterministic synthetic parameters (Conv1d weight (out,in,k) -> (k,in,out)).
    params = {
        "w1": 0.1 * jax.random.normal(ks[0], (KERNEL_SIZE, IN_DIMS, N_CHANS), jnp.float32),
        "b1": 0.01 * jax.random.normal(ks[1], (1, N_CHANS), jnp.float32),
        "g1": 1.0 + 0.05 * jax.random.normal(ks[2], (1, N_CHANS), jnp.float32),
        "be1": 0.05 * jax.random.normal(ks[3], (1, N_CHANS), jnp.float32),
        "w2": 0.1 * jax.random.normal(ks[4], (KERNEL_SIZE, N_CHANS, N_CHANS), jnp.float32),
        "b2": 0.01 * jax.random.normal(ks[5], (1, N_CHANS), jnp.float32),
        "g2": 1.0 + 0.05 * jax.random.normal(ks[6], (1, N_CHANS), jnp.float32),
        "be2": 0.05 * jax.random.normal(ks[7], (1, N_CHANS), jnp.float32),
        "wl": 0.1 * jax.random.normal(ks[8], (1, N_CHANS), jnp.float32),
        "bl": 0.01 * jax.random.normal(ks[9], (1, 1), jnp.float32),
    }

    xs = jax.random.normal(ks[10], (B, T, IN_DIMS), jnp.float32)
    # mask: True = padded frame (last few frames of second example padded)
    lengths = jnp.array([T, T - 4])
    x_masks = jnp.arange(T)[None, :] >= lengths[:, None]            # (B, T) bool

    dur = jax.block_until_ready(duration_predictor(xs, x_masks, params))
    ref = reference(xs, x_masks, params)

    assert dur.shape == (B, T)
    assert jnp.allclose(dur, ref, atol=1e-4, rtol=1e-3), (dur, ref)

    print("KERNEL_OK")
</pallas_src>

<mosaic_0001>
module attributes {stable_mosaic.version = 11 : i64} {
  func.func @duration_predictor_kernel(%arg0: i32, %arg1: memref<32x96xf32, #tpu.memory_space<vmem>>, %arg2: memref<64x32xf32, #tpu.memory_space<vmem>>, %arg3: memref<1x32xf32, #tpu.memory_space<vmem>>, %arg4: memref<96x64xf32, #tpu.memory_space<vmem>>, %arg5: memref<192x64xf32, #tpu.memory_space<vmem>>, %arg6: memref<8x64xf32, #tpu.memory_space<vmem>>, %arg7: memref<1x32xf32, #tpu.memory_space<vmem>>) attributes {dimension_semantics = [#tpu.dimension_semantics<arbitrary>], iteration_bounds = array<i64: 1>, scalar_prefetch = 0 : i64, scratch_operands = 0 : i64, tpu.core_type = #tpu.core_type<tc>, window_params = [{pipeline_mode = #tpu.pipeline_mode<synchronous>, transform_indices = @transform_0, window_bounds = array<i64: 32, 96>}, {pipeline_mode = #tpu.pipeline_mode<synchronous>, transform_indices = @transform_1, window_bounds = array<i64: 64, 32>}, {pipeline_mode = #tpu.pipeline_mode<synchronous>, transform_indices = @transform_2, window_bounds = array<i64: 1, 32>}, {pipeline_mode = #tpu.pipeline_mode<synchronous>, transform_indices = @transform_3, window_bounds = array<i64: 96, 64>}, {pipeline_mode = #tpu.pipeline_mode<synchronous>, transform_indices = @transform_4, window_bounds = array<i64: 192, 64>}, {pipeline_mode = #tpu.pipeline_mode<synchronous>, transform_indices = @transform_5, window_bounds = array<i64: 8, 64>}, {pipeline_mode = #tpu.pipeline_mode<synchronous>, transform_indices = @transform_6, window_bounds = array<i64: 1, 32>}]} {
    %c0 = arith.constant 0 : index
    %c0_0 = arith.constant 0 : index
    %0 = vector.load %arg6[%c0, %c0_0] : memref<8x64xf32, #tpu.memory_space<vmem>>, vector<1x64xf32>
    %c1 = arith.constant 1 : index
    %c0_1 = arith.constant 0 : index
    %1 = vector.load %arg6[%c1, %c0_1] : memref<8x64xf32, #tpu.memory_space<vmem>>, vector<1x64xf32>
    %c2 = arith.constant 2 : index
    %c0_2 = arith.constant 0 : index
    %2 = vector.load %arg6[%c2, %c0_2] : memref<8x64xf32, #tpu.memory_space<vmem>>, vector<1x64xf32>
    %c3 = arith.constant 3 : index
    %c0_3 = arith.constant 0 : index
    %3 = vector.load %arg6[%c3, %c0_3] : memref<8x64xf32, #tpu.memory_space<vmem>>, vector<1x64xf32>
    %c4 = arith.constant 4 : index
    %c0_4 = arith.constant 0 : index
    %4 = vector.load %arg6[%c4, %c0_4] : memref<8x64xf32, #tpu.memory_space<vmem>>, vector<1x64xf32>
    %c5 = arith.constant 5 : index
    %c0_5 = arith.constant 0 : index
    %5 = vector.load %arg6[%c5, %c0_5] : memref<8x64xf32, #tpu.memory_space<vmem>>, vector<1x64xf32>
    %c6 = arith.constant 6 : index
    %c0_6 = arith.constant 0 : index
    %6 = vector.load %arg6[%c6, %c0_6] : memref<8x64xf32, #tpu.memory_space<vmem>>, vector<1x64xf32>
    %c7 = arith.constant 7 : index
    %c0_7 = arith.constant 0 : index
    %7 = vector.load %arg6[%c7, %c0_7] : memref<8x64xf32, #tpu.memory_space<vmem>>, vector<1x1xf32>
    %c0_8 = arith.constant 0 : index
    %c0_9 = arith.constant 0 : index
    %8 = vector.load %arg1[%c0_8, %c0_9] : memref<32x96xf32, #tpu.memory_space<vmem>>, vector<32x96xf32>
    %c0_10 = arith.constant 0 : index
    %c0_11 = arith.constant 0 : index
    %9 = vector.load %arg4[%c0_10, %c0_11] : memref<96x64xf32, #tpu.memory_space<vmem>>, vector<96x64xf32>
    %cst = arith.constant dense<0.000000e+00> : vector<32x64xf32>
    %10 = tpu.matmul %8, %9, %cst {dimension_numbers = #tpu.dot_dimension_numbers<[1], [0], [0], [1], [0, 0, 1, 1], [], []>} : vector<32x96xf32>, vector<96x64xf32>, vector<32x64xf32> -> vector<32x64xf32>
    %11 = vector.broadcast %0 : vector<1x64xf32> to vector<32x64xf32>
    %12 = arith.addf %10, %11 : vector<32x64xf32>
    %cst_12 = arith.constant 0.000000e+00 : f32
    %13 = vector.broadcast %cst_12 : f32 to vector<32x64xf32>
    %14 = arith.maximumf %12, %13 : vector<32x64xf32>
    %cst_13 = arith.constant dense<0.000000e+00> : vector<32xf32>
    %15 = vector.multi_reduction <add>, %14, %cst_13 [1] : vector<32x64xf32> to vector<32xf32>
    %16 = vector.shape_cast %15 : vector<32xf32> to vector<32x1xf32>
    %cst_14 = arith.constant 6.400000e+01 : f32
    %17 = vector.broadcast %cst_14 : f32 to vector<32x1xf32>
    %18 = arith.divf %16, %17 : vector<32x1xf32>
    %19 = vector.broadcast %18 : vector<32x1xf32> to vector<32x64xf32>
    %20 = arith.subf %14, %19 : vector<32x64xf32>
    %21 = vector.broadcast %18 : vector<32x1xf32> to vector<32x64xf32>
    %22 = arith.subf %14, %21 : vector<32x64xf32>
    %23 = arith.mulf %20, %22 : vector<32x64xf32>
    %cst_15 = arith.constant dense<0.000000e+00> : vector<32xf32>
    %24 = vector.multi_reduction <add>, %23, %cst_15 [1] : vector<32x64xf32> to vector<32xf32>
    %25 = vector.shape_cast %24 : vector<32xf32> to vector<32x1xf32>
    %cst_16 = arith.constant 6.400000e+01 : f32
    %26 = vector.broadcast %cst_16 : f32 to vector<32x1xf32>
    %27 = arith.divf %25, %26 : vector<32x1xf32>
    %28 = vector.broadcast %18 : vector<32x1xf32> to vector<32x64xf32>
    %29 = arith.subf %14, %28 : vector<32x64xf32>
    %cst_17 = arith.constant 9.99999996E-13 : f32
    %30 = vector.broadcast %cst_17 : f32 to vector<32x1xf32>
    %31 = arith.addf %27, %30 : vector<32x1xf32>
    %32 = math.rsqrt %31 : vector<32x1xf32>
    %33 = vector.broadcast %32 : vector<32x1xf32> to vector<32x64xf32>
    %34 = arith.mulf %29, %33 : vector<32x64xf32>
    %35 = vector.broadcast %1 : vector<1x64xf32> to vector<32x64xf32>
    %36 = arith.mulf %34, %35 : vector<32x64xf32>
    %37 = vector.broadcast %2 : vector<1x64xf32> to vector<32x64xf32>
    %38 = arith.addf %36, %37 : vector<32x64xf32>
    %c0_18 = arith.constant 0 : index
    %c0_19 = arith.constant 0 : index
    %39 = vector.load %arg2[%c0_18, %c0_19] : memref<64x32xf32, #tpu.memory_space<vmem>>, vector<32x32xf32>
    %cst_20 = arith.constant dense<0.000000e+00> : vector<32x64xf32>
    %40 = tpu.matmul %39, %38, %cst_20 {dimension_numbers = #tpu.dot_dimension_numbers<[1], [0], [0], [1], [0, 0, 1, 1], [], []>} : vector<32x32xf32>, vector<32x64xf32>, vector<32x64xf32> -> vector<32x64xf32>
    %c32 = arith.constant 32 : index
    %c0_21 = arith.constant 0 : index
    %41 = vector.load %arg2[%c32, %c0_21] : memref<64x32xf32, #tpu.memory_space<vmem>>, vector<32x32xf32>
    %cst_22 = arith.constant dense<0.000000e+00> : vector<32x64xf32>
    %42 = tpu.matmul %41, %38, %cst_22 {dimension_numbers = #tpu.dot_dimension_numbers<[1], [0], [0], [1], [0, 0, 1, 1], [], []>} : vector<32x32xf32>, vector<32x64xf32>, vector<32x64xf32> -> vector<32x64xf32>
    %43 = tpu.concatenate %40, %38, %42 in 1 : vector<32x64xf32>, vector<32x64xf32>, vector<32x64xf32> -> vector<32x192xf32>
    %c0_23 = arith.constant 0 : index
    %c0_24 = arith.constant 0 : index
    %44 = vector.load %arg5[%c0_23, %c0_24] : memref<192x64xf32, #tpu.memory_space<vmem>>, vector<192x64xf32>
    %cst_25 = arith.constant dense<0.000000e+00> : vector<32x64xf32>
    %45 = tpu.matmul %43, %44, %cst_25 {dimension_numbers = #tpu.dot_dimension_numbers<[1], [0], [0], [1], [0, 0, 1, 1], [], []>} : vector<32x192xf32>, vector<192x64xf32>, vector<32x64xf32> -> vector<32x64xf32>
    %46 = vector.broadcast %3 : vector<1x64xf32> to vector<32x64xf32>
    %47 = arith.addf %45, %46 : vector<32x64xf32>
    %cst_26 = arith.constant 0.000000e+00 : f32
    %48 = vector.broadcast %cst_26 : f32 to vector<32x64xf32>
    %49 = arith.maximumf %47, %48 : vector<32x64xf32>
    %cst_27 = arith.constant dense<0.000000e+00> : vector<32xf32>
    %50 = vector.multi_reduction <add>, %49, %cst_27 [1] : vector<32x64xf32> to vector<32xf32>
    %51 = vector.shape_cast %50 : vector<32xf32> to vector<32x1xf32>
    %cst_28 = arith.constant 6.400000e+01 : f32
    %52 = vector.broadcast %cst_28 : f32 to vector<32x1xf32>
    %53 = arith.divf %51, %52 : vector<32x1xf32>
    %54 = vector.broadcast %53 : vector<32x1xf32> to vector<32x64xf32>
    %55 = arith.subf %49, %54 : vector<32x64xf32>
    %56 = vector.broadcast %53 : vector<32x1xf32> to vector<32x64xf32>
    %57 = arith.subf %49, %56 : vector<32x64xf32>
    %58 = arith.mulf %55, %57 : vector<32x64xf32>
    %cst_29 = arith.constant dense<0.000000e+00> : vector<32xf32>
    %59 = vector.multi_reduction <add>, %58, %cst_29 [1] : vector<32x64xf32> to vector<32xf32>
    %60 = vector.shape_cast %59 : vector<32xf32> to vector<32x1xf32>
    %cst_30 = arith.constant 6.400000e+01 : f32
    %61 = vector.broadcast %cst_30 : f32 to vector<32x1xf32>
    %62 = arith.divf %60, %61 : vector<32x1xf32>
    %63 = vector.broadcast %53 : vector<32x1xf32> to vector<32x64xf32>
    %64 = arith.subf %49, %63 : vector<32x64xf32>
    %cst_31 = arith.constant 9.99999996E-13 : f32
    %65 = vector.broadcast %cst_31 : f32 to vector<32x1xf32>
    %66 = arith.addf %62, %65 : vector<32x1xf32>
    %67 = math.rsqrt %66 : vector<32x1xf32>
    %68 = vector.broadcast %67 : vector<32x1xf32> to vector<32x64xf32>
    %69 = arith.mulf %64, %68 : vector<32x64xf32>
    %70 = vector.broadcast %4 : vector<1x64xf32> to vector<32x64xf32>
    %71 = arith.mulf %69, %70 : vector<32x64xf32>
    %72 = vector.broadcast %5 : vector<1x64xf32> to vector<32x64xf32>
    %73 = arith.addf %71, %72 : vector<32x64xf32>
    %74 = tpu.transpose %73, [1, 0] : vector<32x64xf32> -> vector<64x32xf32>
    %cst_32 = arith.constant dense<0.000000e+00> : vector<1x32xf32>
    %75 = tpu.matmul %6, %74, %cst_32 {dimension_numbers = #tpu.dot_dimension_numbers<[1], [0], [0], [1], [0, 0, 1, 1], [], []>} : vector<1x64xf32>, vector<64x32xf32>, vector<1x32xf32> -> vector<1x32xf32>
    %76 = vector.broadcast %7 : vector<1x1xf32> to vector<1x32xf32>
    %77 = arith.addf %75, %76 : vector<1x32xf32>
    %c0_33 = arith.constant 0 : index
    %c0_34 = arith.constant 0 : index
    %78 = vector.load %arg3[%c0_33, %c0_34] : memref<1x32xf32, #tpu.memory_space<vmem>>, vector<1x32xf32>
    %79 = arith.mulf %77, %78 : vector<1x32xf32>
    %80 = math.exp %79 : vector<1x32xf32>
    %cst_35 = arith.constant 1.000000e+00 : f32
    %81 = vector.broadcast %cst_35 : f32 to vector<1x32xf32>
    %82 = arith.subf %80, %81 : vector<1x32xf32>
    %cst_36 = arith.constant 0.000000e+00 : f32
    %83 = vector.broadcast %cst_36 : f32 to vector<1x32xf32>
    %84 = arith.maximumf %82, %83 : vector<1x32xf32>
    %c0_37 = arith.constant 0 : index
    %c0_38 = arith.constant 0 : index
    %85 = vector.load %arg7[%c0_37, %c0_38] : memref<1x32xf32, #tpu.memory_space<vmem>>, vector<1x32xf32>
    tpu.vector_store %arg7[%c0_37, %c0_38], %84 {strides = array<i32>} : memref<1x32xf32, #tpu.memory_space<vmem>>, vector<1x32xf32>,
    return
  }
  func.func @transform_0(%arg0: i32) -> (i32, i32) {
    %c0_i32 = arith.constant 0 : i32
    %c0_i32_0 = arith.constant 0 : i32
    %c0_i32_1 = arith.constant 0 : i32
    return %c0_i32, %c0_i32_0 : i32, i32
  }
  func.func @transform_1(%arg0: i32) -> (i32, i32) {
    %c0_i32 = arith.constant 0 : i32
    %c0_i32_0 = arith.constant 0 : i32
    %c0_i32_1 = arith.constant 0 : i32
    return %c0_i32, %c0_i32_0 : i32, i32
  }
  func.func @transform_2(%arg0: i32) -> (i32, i32) {
    %c0_i32 = arith.constant 0 : i32
    %c0_i32_0 = arith.constant 0 : i32
    %c0_i32_1 = arith.constant 0 : i32
    return %c0_i32, %c0_i32_0 : i32, i32
  }
  func.func @transform_3(%arg0: i32) -> (i32, i32) {
    %c0_i32 = arith.constant 0 : i32
    %c0_i32_0 = arith.constant 0 : i32
    %c0_i32_1 = arith.constant 0 : i32
    return %c0_i32, %c0_i32_0 : i32, i32
  }
  func.func @transform_4(%arg0: i32) -> (i32, i32) {
    %c0_i32 = arith.constant 0 : i32
    %c0_i32_0 = arith.constant 0 : i32
    %c0_i32_1 = arith.constant 0 : i32
    return %c0_i32, %c0_i32_0 : i32, i32
  }
  func.func @transform_5(%arg0: i32) -> (i32, i32) {
    %c0_i32 = arith.constant 0 : i32
    %c0_i32_0 = arith.constant 0 : i32
    %c0_i32_1 = arith.constant 0 : i32
    return %c0_i32, %c0_i32_0 : i32, i32
  }
  func.func @transform_6(%arg0: i32) -> (i32, i32) {
    %c0_i32 = arith.constant 0 : i32
    %c0_i32_0 = arith.constant 0 : i32
    %c0_i32_1 = arith.constant 0 : i32
    return %c0_i32, %c0_i32_0 : i32, i32
  }
}

</mosaic_0001>

<bundles_post_ra>
// kernel: tpu_custom_call.1
= control target key start
LH: loop header
LB: loop body
LE: loop exit
PB: predicated region body
PF: predicated region fallthrough
CT: control target
= control target key end

     0   :  { %s959_s0 = inlined_call_operand.vmem [shape: f32[32,96], index: 0, kind: input, shape index: {}]   ;;  %s960_s1 = inlined_call_operand.vmem [shape: f32[64,32], index: 1, kind: input, shape index: {}]   ;;  %s961_s2 = inlined_call_operand.vmem [shape: f32[1,32], index: 2, kind: input, shape index: {}]   ;;  %s962_s3 = inlined_call_operand.vmem [shape: f32[96,64], index: 3, kind: input, shape index: {}]   ;;  %s963_s4 = inlined_call_operand.vmem [shape: f32[192,64], index: 4, kind: input, shape index: {}]   ;;  %s964_s5 = inlined_call_operand.vmem [shape: f32[8,64], index: 5, kind: input, shape index: {}]   ;;  %s965_s6 = inlined_call_operand.hbm [shape: f32[1,32], index: 6, kind: output, shape index: {}]  }
   0x1   :  { %v47_v0 = vld [vmem:[%s962_s3 + $0x58] sm:$0xff]  ;;  %v46_v1 = vld [vmem:[%s962_s3 + $0x50] sm:$0xff]  ;;  %v45_v2 = vld [vmem:[%s962_s3 + $0x48] sm:$0xff] }
   0x2   :  { %66 = vmatpush.msra.mxu0 %v47_v0  ;;  %v44_v3 = vld [vmem:[%s962_s3 + $0x40] sm:$0xff]  ;;  %v43_v4 = vld [vmem:[%s962_s3 + $0x38] sm:$0xff] }
   0x4   :  { %67 = vmatpush.msra.mxu0 %v46_v1 }
   0x6   :  { %68 = vmatpush.msra.mxu0 %v45_v2 }
   0x8   :  { %69 = vmatpush.msra.mxu0 %v44_v3 }
   0x9   :  { %11 = vsyncpa [#allocation3], 0  ;;  %v42_v5 = vld [vmem:[%s962_s3 + $0x30] sm:$0xff]  ;;  %v41_v6 = vld [vmem:[%s962_s3 + $0x28] sm:$0xff]  ;;  %vm49_vm0 = vcmask 785408   ;;  %vm95_vm1 = vcmask 523264  }
   0xa   :  { %70 = vmatpush.msra.mxu0 %v43_v4  ;;  %v40_v7 = vld [vmem:[%s962_s3 + $0x20] sm:$0xff]  ;;  %v39_v8 = vld [vmem:[%s962_s3 + $0x18] sm:$0xff]  ;;  %v38_v9 = vld [vmem:[%s962_s3 + $0x10] sm:$0xff]  ;;  %v657_v33 = vmov 64.0   ;;  %s658_s9 = smov 64   ;;  %vm205_vm15 = vcmask 261120  }
   0xb   :  { %v37_v10 = vld [vmem:[%s962_s3 + $0x8] sm:$0xff]  ;;  %v36_v11 = vld [vmem:[%s962_s3] sm:$0xff]  ;;  %v34_v14 = vld [vmem:[%s959_s0 + $0x10] sm:$0xff]  ;;  %611 = vrcp.f32 %v657_v33  ;;  %s564_s8 = sshll.u32 %s965_s6, 4  ;;  %s565_s8 = int_to_ptr.hbm [resolvable:$true] %s564_s8 }
   0xc   :  { %71 = vmatpush.msra.mxu0 %v42_v5  ;;  %v32_v12 = vld [vmem:[%s959_s0] sm:$0xff]  ;;  %v33_v13 = vld [vmem:[%s959_s0 + $0x8] sm:$0xff]  ;;  %v35_v15 = vld [vmem:[%s959_s0 + $0x18] sm:$0xff]  ;;  %s660_s0 = smov [#allocation2]  }
   0xd   :  { %v605_v17 = vld [vmem:[%s964_s5] ss:$0 sm:$0xff]  ;;  %s562_s30 = sshll.u32 %s660_s0, 4  ;;  %s563_s30 = int_to_ptr.vmem [resolvable:$true] %s562_s30 }
   0xe   :  { %72 = vmatpush.msra.mxu0 %v41_v6 }
  0x10   :  { %73 = vmatpush.msra.mxu0 %v40_v7 }
  0x11   :  { %v612_v34 = vpop.eup %611 }
  0x12   :  { %74 = vmatpush.msra.mxu0 %v39_v8  ;;  %v109_v35 = vmul.f32 64.0, %v612_v34  ;;  %vm113_vm2 = vweird.f32 %v612_v34 }
  0x14   :  { %75 = vmatpush.msra.mxu0 %v38_v9  ;;  %v110_v36 = vsub.f32 1.0, %v109_v35 }
  0x16   :  { %76 = vmatpush.msra.mxu0 %v37_v10  ;;  %v111_v37 = vmul.f32 %v612_v34, %v110_v36 }
  0x18   :  { %77 = vmatpush.msra.mxu0 %v36_v11  ;;  %v112_v38 = vadd.f32 %v612_v34, %v111_v37 }
  0x19   :  { %573 = vmatmul.msk.f32.vlgmr.msra.gmra.mxu0 %vm49_vm0, %v32_v12 }
  0x1a   :  { %v751_v39 = vsel %vm113_vm2, %v612_v34, %v112_v38 }
  0x21   :  { %574 = vmatmul.msk.f32.gmra.mxu0 %vm49_vm0, %v33_v13  ;;  %v606_v13 = vld [vmem:[%s964_s5 + $0x1] ss:$0 sm:$0xff] }
  0x29   :  { %575 = vmatmul.msk.f32.gmra.mxu0 %vm49_vm0, %v34_v14 }
  0x31   :  { %576 = vmatmul.msk.f32.gmra.mxu0 %vm49_vm0, %v35_v15 }
  0x96   :  { %v79_v16 = vpop.f32.mrf.mxu0 }
  0x97   :  { %v80_v21 = vadd.f32 %v605_v17, %v79_v16 }
  0x99   :  { %v91_v24 = vmax.f32 %v80_v21, 0.0 }
  0x9b   :  { %v96_v25 = vsel %vm95_vm1, %v91_v24, 0.0 }
  0x9e   :  { %v82_v18 = vpop.f32.mrf.mxu0 }
  0x9f   :  { %v83_v19 = vadd.f32 %v605_v17, %v82_v18 }
  0xa1   :  { %v92_v20 = vmax.f32 %v83_v19, 0.0 }
  0xa3   :  { %v99_v22 = vsel %vm95_vm1, %v92_v20, 0.0 }
  0xa4   :  { %100 = vadd.xlane.f32.xlu1 %v99_v22 }
  0xa6   :  { %v85_v23 = vpop.f32.mrf.mxu0 }
  0xa7   :  { %v86_v29 = vadd.f32 %v605_v17, %v85_v23 }
  0xa9   :  { %v93_v31 = vmax.f32 %v86_v29, 0.0 }
  0xab   :  { %v102_v32 = vsel %vm95_vm1, %v93_v31, 0.0 }
  0xac   :  { %97 = vadd.xlane.f32.xlu1 %v96_v25 }
  0xae   :  { %v88_v26 = vpop.f32.mrf.mxu0 }
  0xaf   :  { %v89_v27 = vadd.f32 %v605_v17, %v88_v26  ;;  %v607_v17 = vld [vmem:[%s964_s5 + $0x2] ss:$0 sm:$0xff] }
  0xb1   :  { %v94_v28 = vmax.f32 %v89_v27, 0.0 }
  0xb3   :  { %v105_v30 = vsel %vm95_vm1, %v94_v28, 0.0 }
  0xb4   :  { %106 = vadd.xlane.f32.xlu0 %v105_v30 }
  0xbc   :  { %103 = vadd.xlane.f32.xlu0 %v102_v32 }
 0x117   :  { %v101_v40 = vpop.xlane.xlu1 %100 }
 0x118   :  { %v116_v41 = vmul.f32 %v751_v39, %v101_v40 }
 0x11a   :  { %v120_v42 = vsub.f32 %v92_v20, %v116_v41 }
 0x11c   :  { %v124_v43 = vmul.f32 %v120_v42, %v120_v42 }
 0x11e   :  { %v130_v44 = vsel %vm95_vm1, %v124_v43, 0.0 }
 0x11f   :  { %131 = vadd.xlane.f32.xlu0 %v130_v44  ;;  %v98_v45 = vpop.xlane.xlu1 %97 }
 0x120   :  { %v115_v46 = vmul.f32 %v751_v39, %v98_v45 }
 0x122   :  { %v119_v47 = vsub.f32 %v91_v24, %v115_v46 }
 0x124   :  { %v123_v48 = vmul.f32 %v119_v47, %v119_v47 }
 0x126   :  { %v127_v49 = vsel %vm95_vm1, %v123_v48, 0.0 }
 0x127   :  { %v107_v50 = vpop.xlane.xlu0 %106  ;;  %128 = vadd.xlane.f32.xlu1 %v127_v49 }
 0x128   :  { %v118_v51 = vmul.f32 %v751_v39, %v107_v50 }
 0x12a   :  { %v758_v52 = vsub.f32 %v94_v28, %v118_v51  ;;  %v201_v51 = vld [vmem:[%s960_s1] sm:$0xff] }
 0x12c   :  { %v126_v53 = vmul.f32 %v758_v52, %v758_v52 }
 0x12e   :  { %v136_v54 = vsel %vm95_vm1, %v126_v53, 0.0  ;;  %v202_v53 = vld [vmem:[%s960_s1 + $0x8] sm:$0xff] }
 0x12f   :  { %137 = vadd.xlane.f32.xlu2 %v136_v54  ;;  %v104_v55 = vpop.xlane.xlu0 %103  ;;  %v204_v54 = vld [vmem:[%s960_s1 + $0x18] sm:$0xff] }
 0x130   :  { %v117_v56 = vmul.f32 %v751_v39, %v104_v55  ;;  %v247_v55 = vld [vmem:[%s960_s1 + $0x20] sm:$0xff] }
 0x132   :  { %v764_v57 = vsub.f32 %v93_v31, %v117_v56  ;;  %v248_v56 = vld [vmem:[%s960_s1 + $0x28] sm:$0xff] }
 0x134   :  { %v125_v58 = vmul.f32 %v764_v57, %v764_v57 }
 0x136   :  { %v133_v59 = vsel %vm95_vm1, %v125_v58, 0.0  ;;  %v250_v58 = vld [vmem:[%s960_s1 + $0x38] sm:$0xff] }
 0x137   :  { %134 = vadd.xlane.f32.xlu2 %v133_v59  ;;  %v327_v59 = vld [vmem:[%s963_s4 + $0x78] sm:$0xff] }
 0x138   :  { %349 = vmatpush.msra.mxu3 %v327_v59 }
 0x192   :  { %v132_v60 = vpop.xlane.xlu0 %131 }
 0x193   :  { %v140_v61 = vmul.f32 %v132_v60, %v751_v39  ;;  %v326_v60 = vld [vmem:[%s963_s4 + $0x70] sm:$0xff] }
 0x194   :  { %350 = vmatpush.msra.mxu3 %v326_v60 }
 0x195   :  { %v144_v62 = vadd.f32 1e-12, %v140_v61  ;;  %v325_v61 = vld [vmem:[%s963_s4 + $0x68] sm:$0xff] }
 0x196   :  { %351 = vmatpush.msra.mxu3 %v325_v61 }
 0x197   :  { %613 = vrsqrt.f32 %v144_v62  ;;  %vm163_vm4 = vweird.f32 %v144_v62 }
 0x19a   :  { %v129_v63 = vpop.xlane.xlu1 %128 }
 0x19b   :  { %v139_v0 = vmul.f32 %v129_v63, %v751_v39  ;;  %v323_v63 = vld [vmem:[%s963_s4 + $0x58] sm:$0xff] }
 0x19d   :  { %v614_v1 = vpop.eup %613  ;;  %v143_v2 = vadd.f32 1e-12, %v139_v0  ;;  %v322_v0 = vld [vmem:[%s963_s4 + $0x50] sm:$0xff] }
 0x19e   :  { %v158_v3 = vmul.f32 %v614_v1, %v144_v62  ;;  %vm164_vm3 = vweird.f32 %v614_v1  ;;  %v324_v62 = vld [vmem:[%s963_s4 + $0x60] sm:$0xff] }
 0x19f   :  { %615 = vrsqrt.f32 %v143_v2  ;;  %vm165_vm5 = vmor %vm163_vm4, %vm164_vm3  ;;  %vm153_vm7 = vweird.f32 %v143_v2  ;;  %352 = vmatpush.msra.mxu3 %v324_v62 }
 0x1a0   :  { %v159_v4 = vmul.f32 %v614_v1, %v158_v3  ;;  %v319_v3 = vld [vmem:[%s963_s4 + $0x38] sm:$0xff] }
 0x1a1   :  { %353 = vmatpush.msra.mxu3 %v323_v63 }
 0x1a2   :  { %v160_v5 = vmul.f32 0.5, %v159_v4  ;;  %v138_v6 = vpop.xlane.xlu2 %137  ;;  %v318_v4 = vld [vmem:[%s963_s4 + $0x30] sm:$0xff] }
 0x1a3   :  { %v142_v7 = vmul.f32 %v138_v6, %v751_v39  ;;  %354 = vmatpush.msra.mxu3 %v322_v0  ;;  %v316_v6 = vld [vmem:[%s963_s4 + $0x20] sm:$0xff] }
 0x1a4   :  { %v161_v8 = vsub.f32 1.5, %v160_v5  ;;  %v317_v5 = vld [vmem:[%s963_s4 + $0x28] sm:$0xff] }
 0x1a5   :  { %v616_v9 = vpop.eup %615  ;;  %v146_v10 = vadd.f32 1e-12, %v142_v7  ;;  %v315_v7 = vld [vmem:[%s963_s4 + $0x18] sm:$0xff] }
 0x1a6   :  { %v162_v11 = vmul.f32 %v614_v1, %v161_v8  ;;  %v148_v12 = vmul.f32 %v616_v9, %v143_v2  ;;  %vm154_vm6 = vweird.f32 %v616_v9  ;;  %v320_v2 = vld [vmem:[%s963_s4 + $0x40] sm:$0xff]  ;;  %v314_v8 = vld [vmem:[%s963_s4 + $0x10] sm:$0xff] }
 0x1a7   :  { %617 = vrsqrt.f32 %v146_v10  ;;  %vm155_vm8 = vmor %vm153_vm7, %vm154_vm6  ;;  %vm183_vm10 = vweird.f32 %v146_v10 }
 0x1a8   :  { %v166_v14 = vsel %vm165_vm5, %v614_v1, %v162_v11  ;;  %v149_v15 = vmul.f32 %v616_v9, %v148_v12  ;;  %v321_v1 = vld [vmem:[%s963_s4 + $0x48] sm:$0xff]  ;;  %v335_v11 = vld [vmem:[%s963_s4 + $0xb8] sm:$0xff]  ;;  %v334_v12 = vld [vmem:[%s963_s4 + $0xb0] sm:$0xff] }
 0x1a9   :  { %v188_v16 = vmul.f32 %v166_v14, %v120_v42  ;;  %355 = vmatpush.msra.mxu3 %v321_v1  ;;  %v332_v14 = vld [vmem:[%s963_s4 + $0xa0] sm:$0xff] }
 0x1aa   :  { %v150_v18 = vmul.f32 0.5, %v149_v15  ;;  %v135_v19 = vpop.xlane.xlu2 %134  ;;  %v331_v15 = vld [vmem:[%s963_s4 + $0x98] sm:$0xff] }
 0x1ab   :  { %v141_v20 = vmul.f32 %v135_v19, %v751_v39  ;;  %v193_v21 = vmul.f32 %v606_v13, %v188_v16  ;;  %356 = vmatpush.msra.mxu3 %v320_v2  ;;  %v330_v16 = vld [vmem:[%s963_s4 + $0x90] sm:$0xff] }
 0x1ac   :  { %v151_v22 = vsub.f32 1.5, %v150_v18  ;;  %v328_v18 = vld [vmem:[%s963_s4 + $0x80] sm:$0xff] }
 0x1ad   :  { %v618_v23 = vpop.eup %617  ;;  %v145_v24 = vadd.f32 1e-12, %v141_v20  ;;  %v198_v25 = vadd.f32 %v607_v17, %v193_v21  ;;  %357 = vmatpush.msra.mxu3 %v319_v3 }
 0x1ae   :  { %v152_v26 = vmul.f32 %v616_v9, %v151_v22  ;;  %v178_v27 = vmul.f32 %v618_v23, %v146_v10  ;;  %vm184_vm9 = vweird.f32 %v618_v23  ;;  %v312_v10 = vld [vmem:[%s963_s4] sm:$0xff] }
 0x1af   :  { %619 = vrsqrt.f32 %v145_v24  ;;  %298 = vrot.lane.b32.xlu0 %v198_v25, %s658_s9  ;;  %vm185_vm11 = vmor %vm183_vm10, %vm184_vm9  ;;  %vm173_vm13 = vweird.f32 %v145_v24  ;;  %358 = vmatpush.msra.mxu3 %v318_v4 }
 0x1b0   :  { %v156_v28 = vsel %vm155_vm8, %v616_v9, %v152_v26  ;;  %v179_v29 = vmul.f32 %v618_v23, %v178_v27  ;;  %v313_v9 = vld [vmem:[%s963_s4 + $0x8] sm:$0xff] }
 0x1b1   :  { %v187_v30 = vmul.f32 %v156_v28, %v119_v47  ;;  %359 = vmatpush.msra.mxu3 %v317_v5 }
 0x1b2   :  { %v180_v31 = vmul.f32 0.5, %v179_v29 }
 0x1b3   :  { %v192_v32 = vmul.f32 %v606_v13, %v187_v30  ;;  %360 = vmatpush.msra.mxu3 %v316_v6 }
 0x1b4   :  { %v181_v33 = vsub.f32 1.5, %v180_v31 }
 0x1b5   :  { %v620_v34 = vpop.eup %619  ;;  %v197_v35 = vadd.f32 %v607_v17, %v192_v32  ;;  %361 = vmatpush.msra.mxu3 %v315_v7 }
 0x1b6   :  { %v182_v36 = vmul.f32 %v618_v23, %v181_v33  ;;  %v168_v37 = vmul.f32 %v620_v34, %v145_v24  ;;  %vm174_vm12 = vweird.f32 %v620_v34 }
 0x1b7   :  { %296 = vrot.lane.b32.xlu2 %v197_v35, %s658_s9  ;;  %vm175_vm14 = vmor %vm173_vm13, %vm174_vm12  ;;  %362 = vmatpush.msra.mxu3 %v314_v8  ;;  %vm555_vm13 = vcmask 253952  }
 0x1b8   :  { %v186_v38 = vsel %vm185_vm11, %v618_v23, %v182_v36  ;;  %v169_v40 = vmul.f32 %v620_v34, %v168_v37 }
 0x1b9   :  { %v190_v41 = vmul.f32 %v186_v38, %v758_v52  ;;  %v203_v52 = vld [vmem:[%s960_s1 + $0x10] sm:$0xff]  ;;  %363 = vmatpush.msra.mxu3 %v313_v9  ;;  %v608_v38 = vld [vmem:[%s964_s5 + $0x3] ss:$0 sm:$0xff] }
 0x1ba   :  { %v170_v42 = vmul.f32 0.5, %v169_v40 }
 0x1bb   :  { %v195_v43 = vmul.f32 %v606_v13, %v190_v41  ;;  %364 = vmatpush.msra.mxu3 %v312_v10 }
 0x1bc   :  { %v171_v44 = vsub.f32 1.5, %v170_v42 }
 0x1bd   :  { %v200_v45 = vadd.f32 %v607_v17, %v195_v43 }
 0x1be   :  { %v172_v46 = vmul.f32 %v620_v34, %v171_v44 }
 0x1bf   :  { %230 = vmatpush.msra.mxu1 %v200_v45  ;;  %595 = vmatpush.msra.mxu2 %v200_v45 }
 0x1c0   :  { %v176_v47 = vsel %vm175_vm14, %v620_v34, %v172_v46  ;;  %302 = vrot.lane.b32.xlu2 %v200_v45, %s658_s9 }
 0x1c1   :  { %v189_v48 = vmul.f32 %v176_v47, %v764_v57  ;;  %v249_v57 = vld [vmem:[%s960_s1 + $0x30] sm:$0xff] }
 0x1c3   :  { %v194_v49 = vmul.f32 %v606_v13, %v189_v48  ;;  %v333_v13 = vld [vmem:[%s963_s4 + $0xa8] sm:$0xff] }
 0x1c5   :  { %v199_v50 = vadd.f32 %v607_v17, %v194_v49  ;;  %v329_v17 = vld [vmem:[%s963_s4 + $0x88] sm:$0xff] }
 0x1c7   :  { %231 = vmatpush.msra.mxu1 %v199_v50  ;;  %596 = vmatpush.msra.mxu2 %v199_v50 }
 0x1c8   :  { %300 = vrot.lane.b32.xlu1 %v199_v50, %s658_s9 }
 0x1c9   :  { %232 = vmatpush.msra.mxu1 %v198_v25  ;;  %597 = vmatpush.msra.mxu2 %v198_v25 }
 0x1cb   :  { %233 = vmatpush.msra.mxu1 %v197_v35  ;;  %598 = vmatpush.msra.mxu2 %v197_v35 }
 0x1cc   :  { %577 = vmatmul.msk.f32.vlgmr.msra.gmra.mxu1 %vm205_vm15, %v201_v51  ;;  %579 = vmatmul.msk.f32.vlgmr.msra.gmra.mxu2 %vm205_vm15, %v203_v52 }
 0x1cd   :  { %275 = vmatpush.msrb.mxu2 %v200_v45  ;;  %386 = vmatpush.msrb.mxu1 %v335_v11 }
 0x1cf   :  { %276 = vmatpush.msrb.mxu2 %v199_v50  ;;  %387 = vmatpush.msrb.mxu1 %v334_v12 }
 0x1d1   :  { %277 = vmatpush.msrb.mxu2 %v198_v25  ;;  %388 = vmatpush.msrb.mxu1 %v333_v13 }
 0x1d3   :  { %278 = vmatpush.msrb.mxu2 %v197_v35  ;;  %389 = vmatpush.msrb.mxu1 %v332_v14 }
 0x1d4   :  { %578 = vmatmul.msk.f32.gmra.mxu1 %vm205_vm15, %v202_v53  ;;  %580 = vmatmul.msk.f32.gmra.mxu2 %vm205_vm15, %v204_v54 }
 0x1d5   :  { %390 = vmatpush.msrb.mxu1 %v331_v15 }
 0x1d7   :  { %391 = vmatpush.msrb.mxu1 %v330_v16 }
 0x1d9   :  { %392 = vmatpush.msrb.mxu1 %v329_v17 }
 0x1db   :  { %393 = vmatpush.msrb.mxu1 %v328_v18 }
 0x1dc   :  { %581 = vmatmul.msk.f32.vlgmr.msrb.gmra.mxu2 %vm205_vm15, %v247_v55 }
 0x1e4   :  { %582 = vmatmul.msk.f32.gmra.mxu2 %vm205_vm15, %v248_v56 }
 0x1ec   :  { %583 = vmatmul.msk.f32.gmra.mxu2 %vm205_vm15, %v249_v57 }
 0x1f4   :  { %584 = vmatmul.msk.f32.gmra.mxu2 %vm205_vm15, %v250_v58 }
 0x211   :  { %v297_v19 = vpop.permute.xlu2 %296 }
 0x21a   :  { %v303_v30 = vpop.permute.xlu2 %302 }
 0x221   :  { %v299_v23 = vpop.permute.xlu0 %298 }
 0x23a   :  { %v301_v27 = vpop.permute.xlu1 %300 }
 0x249   :  { %v235_v20 = vpop.f32.mrf.mxu1 }
 0x24a   :  { %v308_v21 = vsel %vm95_vm1, %v235_v20, %v297_v19 }
 0x24b   :  { %365 = vmatmul.f32.vlgmr.msra.gmra.mxu3 %v308_v21 }
 0x24f   :  { %v241_v22 = vpop.f32.mrf.mxu2 }
 0x250   :  { %v310_v28 = vsel %vm95_vm1, %v241_v22, %v301_v27 }
 0x251   :  { %v238_v24 = vpop.f32.mrf.mxu1 }
 0x252   :  { %v309_v25 = vsel %vm95_vm1, %v238_v24, %v299_v23 }
 0x253   :  { %368 = vmatmul.f32.gmra.mxu3 %v309_v25 }
 0x257   :  { %v244_v26 = vpop.f32.mrf.mxu2 }
 0x258   :  { %v311_v31 = vsel %vm95_vm1, %v244_v26, %v303_v30 }
 0x25b   :  { %371 = vmatmul.f32.gmra.mxu3 %v310_v28 }
 0x25f   :  { %v280_v29 = vpop.f32.mrf.mxu2 }
 0x260   :  { %585 = vmatmul.msk.f32.vlgmr.msrb.gmra.mxu1 %vm95_vm1, %v280_v29 }
 0x263   :  { %374 = vmatmul.f32.gmra.mxu3 %v311_v31 }
 0x267   :  { %v283_v32 = vpop.f32.mrf.mxu2 }
 0x268   :  { %586 = vmatmul.msk.f32.gmra.mxu1 %vm95_vm1, %v283_v32 }
 0x26f   :  { %v286_v33 = vpop.f32.mrf.mxu2 }
 0x270   :  { %587 = vmatmul.msk.f32.gmra.mxu1 %vm95_vm1, %v286_v33 }
 0x277   :  { %v289_v34 = vpop.f32.mrf.mxu2 }
 0x278   :  { %588 = vmatmul.msk.f32.gmra.mxu1 %vm95_vm1, %v289_v34 }
 0x2ce   :  { %v366_v35 = vpop.f32.mrf.mxu3 }
 0x2cf   :  { %v367_v55 = vadd.f32 %v608_v38, %v366_v35 }
 0x2d6   :  { %v369_v36 = vpop.f32.mrf.mxu3 }
 0x2d7   :  { %v370_v40 = vadd.f32 %v608_v38, %v369_v36 }
 0x2dd   :  { %v395_v37 = vpop.f32.mrf.mxu1 }
 0x2de   :  { %v372_v43 = vpop.f32.mrf.mxu3  ;;  %v396_v57 = vadd.f32 %v395_v37, %v367_v55  ;;  %v609_v55 = vld [vmem:[%s964_s5 + $0x4] ss:$0 sm:$0xff] }
 0x2df   :  { %v373_v46 = vadd.f32 %v608_v38, %v372_v43 }
 0x2e0   :  { %v407_v59 = vmax.f32 %v396_v57, 0.0 }
 0x2e2   :  { %v411_v60 = vsel %vm95_vm1, %v407_v59, 0.0 }
 0x2e5   :  { %v398_v41 = vpop.f32.mrf.mxu1 }
 0x2e6   :  { %v399_v42 = vadd.f32 %v398_v41, %v370_v40  ;;  %v375_v50 = vpop.f32.mrf.mxu3  ;;  %v31_v41 = vld [vmem:[%s964_s5 + $0x7] sm:$0x1] }
 0x2e7   :  { %v376_v52 = vadd.f32 %v608_v38, %v375_v50 }
 0x2e8   :  { %v408_v44 = vmax.f32 %v399_v42, 0.0  ;;  %v659_v42 = vmov 0  }
 0x2e9   :  { %603 = vset.pattern.permute.xlu1 %v659_v42  ;;  %604 = vset.pattern.permute.xlu0 %v659_v42 }
 0x2ea   :  { %v414_v45 = vsel %vm95_vm1, %v408_v44, 0.0 }
 0x2eb   :  { %415 = vadd.xlane.f32.xlu1 %v414_v45 }
 0x2ed   :  { %v401_v47 = vpop.f32.mrf.mxu1 }
 0x2ee   :  { %v402_v48 = vadd.f32 %v401_v47, %v373_v46 }
 0x2f0   :  { %v409_v49 = vmax.f32 %v402_v48, 0.0 }
 0x2f2   :  { %v417_v51 = vsel %vm95_vm1, %v409_v49, 0.0 }
 0x2f3   :  { %418 = vadd.xlane.f32.xlu2 %v417_v51 }
 0x2f5   :  { %v404_v53 = vpop.f32.mrf.mxu1 }
 0x2f6   :  { %v405_v54 = vadd.f32 %v404_v53, %v376_v52 }
 0x2f8   :  { %v410_v56 = vmax.f32 %v405_v54, 0.0 }
 0x2fa   :  { %v420_v58 = vsel %vm95_vm1, %v410_v56, 0.0 }
 0x2fb   :  { %421 = vadd.xlane.f32.xlu0 %v420_v58 }
 0x303   :  { %412 = vadd.xlane.f32.xlu0 %v411_v60  ;;  %v610_v60 = vld [vmem:[%s964_s5 + $0x5] ss:$0 sm:$0xff] }
 0x35e   :  { %v416_v61 = vpop.xlane.xlu1 %415 }
 0x35f   :  { %v424_v62 = vmul.f32 %v416_v61, %v751_v39 }
 0x361   :  { %v905_v63 = vsub.f32 %v408_v44, %v424_v62 }
 0x363   :  { %v432_v0 = vmul.f32 %v905_v63, %v905_v63 }
 0x365   :  { %v438_v1 = vsel %vm95_vm1, %v432_v0, 0.0 }
 0x366   :  { %v419_v2 = vpop.xlane.xlu2 %418  ;;  %439 = vadd.xlane.f32.xlu0 %v438_v1 }
 0x367   :  { %v425_v3 = vmul.f32 %v419_v2, %v751_v39 }
 0x369   :  { %v911_v4 = vsub.f32 %v409_v49, %v425_v3 }
 0x36b   :  { %v433_v5 = vmul.f32 %v911_v4, %v911_v4 }
 0x36d   :  { %v441_v6 = vsel %vm95_vm1, %v433_v5, 0.0 }
 0x36e   :  { %v422_v7 = vpop.xlane.xlu0 %421  ;;  %442 = vadd.xlane.f32.xlu1 %v441_v6 }
 0x36f   :  { %v426_v8 = vmul.f32 %v422_v7, %v751_v39 }
 0x371   :  { %v917_v9 = vsub.f32 %v410_v56, %v426_v8 }
 0x373   :  { %v434_v10 = vmul.f32 %v917_v9, %v917_v9 }
 0x375   :  { %v444_v11 = vsel %vm95_vm1, %v434_v10, 0.0 }
 0x376   :  { %v413_v12 = vpop.xlane.xlu0 %412  ;;  %445 = vadd.xlane.f32.xlu2 %v444_v11 }
 0x377   :  { %v423_v13 = vmul.f32 %v413_v12, %v751_v39  ;;  %v549_v12 = vld [vmem:[%s961_s2] sm:$0x1] }
 0x379   :  { %v923_v14 = vsub.f32 %v407_v59, %v423_v13 }
 0x37b   :  { %v431_v15 = vmul.f32 %v923_v14, %v923_v14 }
 0x37d   :  { %v435_v16 = vsel %vm95_vm1, %v431_v15, 0.0 }
 0x37e   :  { %436 = vadd.xlane.f32.xlu2 %v435_v16 }
 0x387   :  { %511 = vperm.xlu1 %603, %v31_v41  }
 0x3d9   :  { %v440_v17 = vpop.xlane.xlu0 %439 }
 0x3da   :  { %v448_v18 = vmul.f32 %v440_v17, %v751_v39 }
 0x3dc   :  { %v452_v19 = vadd.f32 1e-12, %v448_v18 }
 0x3de   :  { %621 = vrsqrt.f32 %v452_v19  ;;  %vm471_vm8 = vweird.f32 %v452_v19 }
 0x3e1   :  { %v443_v20 = vpop.xlane.xlu1 %442 }
 0x3e2   :  { %v449_v21 = vmul.f32 %v443_v20, %v751_v39 }
 0x3e4   :  { %v453_v22 = vadd.f32 1e-12, %v449_v21  ;;  %v622_v23 = vpop.eup %621 }
 0x3e5   :  { %v466_v27 = vmul.f32 %v622_v23, %v452_v19  ;;  %vm472_vm4 = vweird.f32 %v622_v23 }
 0x3e6   :  { %623 = vrsqrt.f32 %v453_v22  ;;  %vm481_vm2 = vweird.f32 %v453_v22  ;;  %vm473_vm9 = vmor %vm471_vm8, %vm472_vm4 }
 0x3e7   :  { %v467_v31 = vmul.f32 %v622_v23, %v466_v27 }
 0x3e9   :  { %v446_v24 = vpop.xlane.xlu2 %445  ;;  %v468_v36 = vmul.f32 0.5, %v467_v31 }
 0x3ea   :  { %v450_v25 = vmul.f32 %v446_v24, %v751_v39 }
 0x3eb   :  { %v469_v44 = vsub.f32 1.5, %v468_v36 }
 0x3ec   :  { %v624_v26 = vpop.eup %623  ;;  %v454_v28 = vadd.f32 1e-12, %v450_v25 }
 0x3ed   :  { %v476_v29 = vmul.f32 %v624_v26, %v453_v22  ;;  %vm482_vm0 = vweird.f32 %v624_v26  ;;  %v470_v48 = vmul.f32 %v622_v23, %v469_v44 }
 0x3ee   :  { %625 = vrsqrt.f32 %v454_v28  ;;  %vm483_vm5 = vmor %vm481_vm2, %vm482_vm0  ;;  %vm491_vm6 = vweird.f32 %v454_v28 }
 0x3ef   :  { %v477_v30 = vmul.f32 %v624_v26, %v476_v29  ;;  %v474_v57 = vsel %vm473_vm9, %v622_v23, %v470_v48 }
 0x3f0   :  { %v496_v62 = vmul.f32 %v474_v57, %v905_v63  ;;  %v30_v63 = vld [vmem:[%s964_s5 + $0x6] sm:$0x1] }
 0x3f1   :  { %v478_v32 = vmul.f32 0.5, %v477_v30  ;;  %v437_v33 = vpop.xlane.xlu2 %436 }
 0x3f2   :  { %v447_v34 = vmul.f32 %v437_v33, %v751_v39  ;;  %v501_v6 = vmul.f32 %v609_v55, %v496_v62 }
 0x3f3   :  { %v479_v38 = vsub.f32 1.5, %v478_v32 }
 0x3f4   :  { %v626_v35 = vpop.eup %625  ;;  %v451_v37 = vadd.f32 1e-12, %v447_v34  ;;  %v506_v7 = vadd.f32 %v610_v60, %v501_v6 }
 0x3f5   :  { %v486_v40 = vmul.f32 %v626_v35, %v454_v28  ;;  %v480_v45 = vmul.f32 %v624_v26, %v479_v38  ;;  %vm492_vm3 = vweird.f32 %v626_v35 }
 0x3f6   :  { %627 = vrsqrt.f32 %v451_v37  ;;  %vm493_vm7 = vmor %vm491_vm6, %vm492_vm3  ;;  %vm461_vm11 = vweird.f32 %v451_v37 }
 0x3f7   :  { %v487_v43 = vmul.f32 %v626_v35, %v486_v40  ;;  %v484_v49 = vsel %vm483_vm5, %v624_v26, %v480_v45 }
 0x3f8   :  { %v497_v54 = vmul.f32 %v484_v49, %v911_v4 }
 0x3f9   :  { %v488_v46 = vmul.f32 0.5, %v487_v43  ;;  %v512_v10 = vpop.permute.xlu1 %511 }
 0x3fa   :  { %v502_v1 = vmul.f32 %v609_v55, %v497_v54 }
 0x3fb   :  { %v489_v39 = vsub.f32 1.5, %v488_v46 }
 0x3fc   :  { %v628_v47 = vpop.eup %627  ;;  %v507_v5 = vadd.f32 %v610_v60, %v502_v1 }
 0x3fd   :  { %v490_v50 = vmul.f32 %v626_v35, %v489_v39  ;;  %v456_v51 = vmul.f32 %v628_v47, %v451_v37  ;;  %vm462_vm10 = vweird.f32 %v628_v47 }
 0x3fe   :  { %vm463_vm12 = vmor %vm461_vm11, %vm462_vm10 }
 0x3ff   :  { %v494_v52 = vsel %vm493_vm7, %v626_v35, %v490_v50  ;;  %v457_v53 = vmul.f32 %v628_v47, %v456_v51 }
 0x400   :  { %v498_v56 = vmul.f32 %v494_v52, %v917_v9 }
 0x401   :  { %v458_v58 = vmul.f32 0.5, %v457_v53 }
 0x402   :  { %v503_v59 = vmul.f32 %v609_v55, %v498_v56 }
 0x403   :  { %v459_v61 = vsub.f32 1.5, %v458_v58 }
 0x404   :  { %v508_v0 = vadd.f32 %v610_v60, %v503_v59 }
 0x405   :  { %v460_v2 = vmul.f32 %v628_v47, %v459_v61 }
 0x406   :  { %589 = vmatpush.xpose.msk.msra.mxu2 %vm95_vm1, %v508_v0 }
 0x407   :  { %v464_v3 = vsel %vm463_vm12, %v628_v47, %v460_v2 }
 0x408   :  { %v495_v4 = vmul.f32 %v464_v3, %v923_v14 }
 0x40a   :  { %590 = vmatpush.xpose.msk.msra.mxu2 %vm95_vm1, %v507_v5  ;;  %v500_v8 = vmul.f32 %v609_v55, %v495_v4 }
 0x40c   :  { %v505_v9 = vadd.f32 %v610_v60, %v500_v8 }
 0x40e   :  { %591 = vmatpush.xpose.msk.msra.mxu2 %vm95_vm1, %v506_v7 }
 0x412   :  { %592 = vmatpush.xpose.msk.msra.mxu2 %vm95_vm1, %v505_v9 }
 0x415   :  { %593 = vmatmul.msk.f32.vlgmr.msra.gmra.mxu2 %vm95_vm1, %v30_v63 }
 0x498   :  { %v546_v11 = vpop.f32.mrf.mxu2 }
 0x499   :  { %v547_v13 = vadd.f32 %v546_v11, %v512_v10 }
 0x49b   :  { %v550_v14 = vmul.f32 %v549_v12, %v547_v13 }
 0x49d   :  { %v551_v15 = vmul.f32 1.442695, %v550_v14 }
 0x49f   :  { %629 = vpow2.f32 %v551_v15 }
 0x4a5   :  { %v630_v16 = vpop.eup %629 }
 0x4a6   :  { %v594_v17 = vadd.f32 -1.0, %v630_v16 }
 0x4a8   :  { %v554_v18 = vmax.f32 %v594_v17, 0.0 }
 0x4aa   :  { %556 = vst.msk [vmem:[#allocation2] sm:$0x1] %vm555_vm13, %v554_v18 }
 0x4ab   :  { %567 = dma.vmem_to_hbm [thread:$0]  %s563_s30, 16, %s565_s8, [#allocation3]  }
 0x4ac   :  { %655 = dma.done.wait [#allocation3], 16  }
 0x4ad   :  { %656 = vsyncadd [#allocation3], 4294967280 }
 0x4ae   :  { %572 = vsyncpa [#allocation3], 1 }

</bundles_post_ra>
